<compile_context>
chip_gen: v7x
topology: tpu7x:2x2x1
jax: 0.10.0
libtpu: 0.0.40
codegen_flags: <defaults>
</compile_context>

<pallas_src>
import functools

import jax
import jax.numpy as jnp
from jax import lax
from jax.experimental import pallas as pl
from jax.experimental.pallas import tpu as pltpu

HIDDEN = 64                # fixed by the module
FUSED_H = 2 * HIDDEN       # 128: actor|critic hidden fused -> lane-dense
OUT_W = 2 * HIDDEN         # 128: lane-padded fused output slab width


def policy_kernel(x_ref, w1_ref, w2_ref, bias_ref, out_ref, *, action_space):
    x = x_ref[...]

    # Layer 1 (fused actor|critic): one [S,128] matmul, full-vreg hidden.
    h = jnp.dot(x, w1_ref[...], preferred_element_type=jnp.float32) + bias_ref[0:1, :]
    h = jnp.maximum(h, 0.0)

    # Layer 2 (block-diagonal fused): cols 0:A = actor logits, col A = value,
    # remaining lanes are exact zeros (zero weights + zero bias padding).
    z = jnp.dot(h, w2_ref[...], preferred_element_type=jnp.float32) + bias_ref[1:2, :]

    col = lax.broadcasted_iota(jnp.int32, z.shape, dimension=1)
    logit_mask = col < action_space

    # Stable softmax over the first `action_space` lanes only; dead lanes are
    # masked to -inf BEFORE the exp so no inf intermediates are ever produced.
    m = jnp.max(jnp.where(logit_mask, z, -jnp.inf), axis=-1, keepdims=True)
    e = jnp.exp(jnp.where(logit_mask, z - m, -jnp.inf))
    probs = e * pl.reciprocal(jnp.sum(e, axis=-1, keepdims=True))  # exact rcp (1e-5 tol)

    # Single lane-dense output slab: probs in cols 0:A, value in col A, zeros after.
    out_ref[...] = probs + jnp.where(col == action_space, z, 0.0)


def _round_up(v, m):
    return ((v + m - 1) // m) * m


def _select_batch_tile(B, S, *, max_tile, vmem_budget_bytes, io_buffers,
                       split_for_megacore):
    """Largest batch tile that fits the VMEM budget, shaped for megacore."""
    # Resident (single-buffered) weight footprint: W1 [S,128] + W2 [128,128]
    # + bias (row-padded to 8 sublanes), f32.
    resident = 4 * (S * FUSED_H + FUSED_H * OUT_W + 8 * OUT_W)
    # Pipelined per-batch-row footprint: x tile + out tile, f32, io_buffers deep.
    per_row = 4 * io_buffers * (S + OUT_W)

    budget_rows = (vmem_budget_bytes - resident) // per_row
    tb = min(int(max_tile), int(budget_rows))
    tb = max(8, (tb // 8) * 8)             # sublane-aligned tile

    b_pad = _round_up(B, 8)
    if tb >= b_pad:
        if split_for_megacore and b_pad >= 512:
            # One tile would cover the whole batch -> split in two so both of
            # v7x's TensorCores get a tile (no-op cost on 1-TC v5e/v6e).
            tb = _round_up(pl.cdiv(b_pad, 2), 8)
        else:
            tb = b_pad
    return tb, resident, per_row


def policy_forward(x, packed, action_space, *, max_tile=1024,
                   vmem_budget_bytes=48 << 20, io_buffer_count=None,
                   split_for_megacore=True):
    """Fused actor-critic forward in a single Pallas kernel.

    Returns (probs [B, A], value [B, 1]); `probs` parameterizes the
    Categorical distribution the PyTorch module returns.
    """
    B, S = x.shape
    io_buffers = io_buffer_count if io_buffer_count is not None else 2
    TB, resident, per_row = _select_batch_tile(
        B, S, max_tile=max_tile, vmem_budget_bytes=vmem_budget_bytes,
        io_buffers=io_buffers, split_for_megacore=split_for_megacore)
    grid = (pl.cdiv(B, TB),)

    # Ask the compiler for what this tiling needs (+ headroom); capped at the
    # budget so we stay under v7x's 64 MiB physical VMEM, floored at 32 MiB so
    # v5e's 16 MiB scoped default never blocks the bigger tiles.
    needed = resident + TB * per_row
    vmem_limit = int(min(vmem_budget_bytes, max(needed + (4 << 20), 32 << 20)))

    resident_mode = pl.Buffered(1)   # weights/bias never change across grid steps
    io_mode = pl.Buffered(io_buffer_count) if io_buffer_count is not None else None

    out = pl.pallas_call(
        functools.partial(policy_kernel, action_space=action_space),
        out_shape=jax.ShapeDtypeStruct((B, OUT_W), jnp.float32),
        grid_spec=pltpu.PrefetchScalarGridSpec(
            num_scalar_prefetch=0,
            grid=grid,
            in_specs=[
                pl.BlockSpec((TB, S), lambda i: (i, 0),
                             pipeline_mode=io_mode),                 # x: batch-tiled
                pl.BlockSpec((S, FUSED_H), lambda i: (0, 0),
                             pipeline_mode=resident_mode),           # W1 resident
                pl.BlockSpec((FUSED_H, OUT_W), lambda i: (0, 0),
                             pipeline_mode=resident_mode),           # W2 resident
                pl.BlockSpec((2, OUT_W), lambda i: (0, 0),
                             pipeline_mode=resident_mode),           # fused biases
            ],
            out_specs=pl.BlockSpec((TB, OUT_W), lambda i: (i, 0),
                                   pipeline_mode=io_mode),
        ),
        compiler_params=pltpu.CompilerParams(
            dimension_semantics=("parallel",),
            vmem_limit_bytes=vmem_limit),
    )(x, packed["w1"], packed["w2"], packed["bias"])

    probs = out[:, :action_space]
    value = out[:, action_space:action_space + 1]
    return probs, value


def init_params(key, state_space, action_space):
    """Matches Policy.init_weights(): normal(0,1) weights, zero biases.

    Weights are stored as [in, out] (transposed nn.Linear weights).
    """
    k1, k2, k3, k4 = jax.random.split(key, 4)
    return {
        "w1a": jax.random.normal(k1, (state_space, HIDDEN), jnp.float32),
        "b1a": jnp.zeros((1, HIDDEN), jnp.float32),
        "w2m": jax.random.normal(k2, (HIDDEN, action_space), jnp.float32),
        "b2m": jnp.zeros((1, action_space), jnp.float32),
        "w1c": jax.random.normal(k3, (state_space, HIDDEN), jnp.float32),
        "b1c": jnp.zeros((1, HIDDEN), jnp.float32),
        "w2v": jax.random.normal(k4, (HIDDEN, 1), jnp.float32),
        "b2v": jnp.zeros((1, 1), jnp.float32),
    }


def pack_params(p, action_space):
    """Fuse the four Linear layers into 3 lane-dense kernel operands.

    w1   [S, 128]    = [w1a | w1c]
    w2   [128, 128]  = block-diagonal: [:64, :A] = w2m, [64:, A] = w2v, else 0
    bias [2, 128]    = row 0: [b1a | b1c], row 1: [b2m, b2v, 0...]
    """
    A = action_space
    assert A + 1 <= OUT_W, "action_space too large for the lane-padded output slab"

    w1 = jnp.concatenate([p["w1a"], p["w1c"]], axis=1)            # [S, 128]
    b1 = jnp.concatenate([p["b1a"], p["b1c"]], axis=1)            # [1, 128]

    w2 = jnp.zeros((FUSED_H, OUT_W), jnp.float32)
    w2 = w2.at[:HIDDEN, :A].set(p["w2m"])                          # actor logits block
    w2 = w2.at[HIDDEN:, A:A + 1].set(p["w2v"])                     # critic value column

    b2 = jnp.zeros((1, OUT_W), jnp.float32)
    b2 = b2.at[:, :A].set(p["b2m"])
    b2 = b2.at[:, A:A + 1].set(p["b2v"])

    return {"w1": w1, "w2": w2, "bias": jnp.concatenate([b1, b2], axis=0)}


def policy_forward_ref(x, p):
    """Pure-JAX reference (unfused) for correctness checking."""
    h_a = jnp.maximum(x @ p["w1a"] + p["b1a"], 0.0)
    logits = h_a @ p["w2m"] + p["b2m"]
    probs = jax.nn.softmax(logits, axis=-1)
    h_c = jnp.maximum(x @ p["w1c"] + p["b1c"], 0.0)
    value = h_c @ p["w2v"] + p["b2v"]
    return probs, value


if __name__ == "__main__":
    # Small, forward-consistent shapes: batch=8, state_space=128,
    # hidden=64 (fixed by the module), action_space=3 (Pong: stay/up/down).
    B, S, A = 8, 128, 3

    key = jax.random.PRNGKey(0)
    k_params, k_x, k_x2 = jax.random.split(key, 3)
    raw_params = init_params(k_params, state_space=S, action_space=A)
    packed = pack_params(raw_params, action_space=A)

    # Case 1: single-tile batch.
    x = jax.random.normal(k_x, (B, S), jnp.float32)
    probs, value = jax.block_until_ready(policy_forward(x, packed, action_space=A))
    probs_ref, value_ref = policy_forward_ref(x, raw_params)
    assert probs.shape == (B, A) and value.shape == (B, 1)
    assert jnp.allclose(probs, probs_ref, atol=1e-5, rtol=1e-5)
    assert jnp.allclose(value, value_ref, atol=1e-4, rtol=1e-4)
    assert jnp.allclose(jnp.sum(probs, axis=-1), 1.0, atol=1e-5)

    # Case 2: multi-tile grid with a partial last tile (max_tile forced small so
    # the batch-tiling / clipping path is exercised at small shapes).
    B2 = 20
    x2 = jax.random.normal(k_x2, (B2, S), jnp.float32)
    probs2, value2 = jax.block_until_ready(
        policy_forward(x2, packed, action_space=A, max_tile=8))
    probs2_ref, value2_ref = policy_forward_ref(x2, raw_params)
    assert probs2.shape == (B2, A) and value2.shape == (B2, 1)
    assert jnp.allclose(probs2, probs2_ref, atol=1e-5, rtol=1e-5)
    assert jnp.allclose(value2, value2_ref, atol=1e-4, rtol=1e-4)

    print("KERNEL_OK")
</pallas_src>

<mosaic_0001>
module attributes {stable_mosaic.version = 11 : i64} {
  func.func @policy_kernel(%arg0: i32, %arg1: memref<8x128xf32, #tpu.memory_space<vmem>>, %arg2: memref<128x128xf32, #tpu.memory_space<vmem>>, %arg3: memref<128x128xf32, #tpu.memory_space<vmem>>, %arg4: memref<2x128xf32, #tpu.memory_space<vmem>>, %arg5: memref<8x128xf32, #tpu.memory_space<vmem>>) attributes {dimension_semantics = [#tpu.dimension_semantics<parallel>], iteration_bounds = array<i64: 1>, scalar_prefetch = 0 : i64, scratch_operands = 0 : i64, tpu.core_type = #tpu.core_type<tc>, window_params = [{transform_indices = @transform_0, window_bounds = array<i64: 8, 128>}, {pipeline_mode = #tpu.pipeline_mode<synchronous>, transform_indices = @transform_1, window_bounds = array<i64: 128, 128>}, {pipeline_mode = #tpu.pipeline_mode<synchronous>, transform_indices = @transform_2, window_bounds = array<i64: 128, 128>}, {pipeline_mode = #tpu.pipeline_mode<synchronous>, transform_indices = @transform_3, window_bounds = array<i64: 2, 128>}, {transform_indices = @transform_4, window_bounds = array<i64: 8, 128>}]} {
    %c0 = arith.constant 0 : index
    %c0_0 = arith.constant 0 : index
    %0 = vector.load %arg1[%c0, %c0_0] : memref<8x128xf32, #tpu.memory_space<vmem>>, vector<8x128xf32>
    %c0_1 = arith.constant 0 : index
    %c0_2 = arith.constant 0 : index
    %1 = vector.load %arg2[%c0_1, %c0_2] : memref<128x128xf32, #tpu.memory_space<vmem>>, vector<128x128xf32>
    %cst = arith.constant dense<0.000000e+00> : vector<8x128xf32>
    %2 = tpu.matmul %0, %1, %cst {dimension_numbers = #tpu.dot_dimension_numbers<[1], [0], [0], [1], [0, 0, 1, 1], [], []>} : vector<8x128xf32>, vector<128x128xf32>, vector<8x128xf32> -> vector<8x128xf32>
    %c0_3 = arith.constant 0 : index
    %c0_4 = arith.constant 0 : index
    %3 = vector.load %arg4[%c0_3, %c0_4] : memref<2x128xf32, #tpu.memory_space<vmem>>, vector<1x128xf32>
    %4 = vector.broadcast %3 : vector<1x128xf32> to vector<8x128xf32>
    %5 = arith.addf %2, %4 : vector<8x128xf32>
    %cst_5 = arith.constant 0.000000e+00 : f32
    %6 = vector.broadcast %cst_5 : f32 to vector<8x128xf32>
    %7 = arith.maximumf %5, %6 : vector<8x128xf32>
    %c0_6 = arith.constant 0 : index
    %c0_7 = arith.constant 0 : index
    %8 = vector.load %arg3[%c0_6, %c0_7] : memref<128x128xf32, #tpu.memory_space<vmem>>, vector<128x128xf32>
    %cst_8 = arith.constant dense<0.000000e+00> : vector<8x128xf32>
    %9 = tpu.matmul %7, %8, %cst_8 {dimension_numbers = #tpu.dot_dimension_numbers<[1], [0], [0], [1], [0, 0, 1, 1], [], []>} : vector<8x128xf32>, vector<128x128xf32>, vector<8x128xf32> -> vector<8x128xf32>
    %c1 = arith.constant 1 : index
    %c0_9 = arith.constant 0 : index
    %10 = vector.load %arg4[%c1, %c0_9] : memref<2x128xf32, #tpu.memory_space<vmem>>, vector<1x128xf32>
    %11 = vector.broadcast %10 : vector<1x128xf32> to vector<8x128xf32>
    %12 = arith.addf %9, %11 : vector<8x128xf32>
    %13 = tpu.iota {dimensions = array<i32: 1>} : vector<8x128xi32>
    %c3_i32 = arith.constant 3 : i32
    %14 = vector.broadcast %c3_i32 : i32 to vector<8x128xi32>
    %15 = arith.cmpi slt, %13, %14 : vector<8x128xi32>
    %cst_10 = arith.constant 0xFF800000 : f32
    %16 = vector.broadcast %cst_10 : f32 to vector<8x128xf32>
    %17 = arith.select %15, %12, %16 : vector<8x128xi1>, vector<8x128xf32>
    %cst_11 = arith.constant dense<0xFF800000> : vector<8xf32>
    %18 = vector.multi_reduction <maximumf>, %17, %cst_11 [1] : vector<8x128xf32> to vector<8xf32>
    %19 = vector.shape_cast %18 : vector<8xf32> to vector<8x1xf32>
    %20 = vector.broadcast %19 : vector<8x1xf32> to vector<8x128xf32>
    %21 = arith.subf %12, %20 : vector<8x128xf32>
    %cst_12 = arith.constant 0xFF800000 : f32
    %22 = vector.broadcast %cst_12 : f32 to vector<8x128xf32>
    %23 = arith.select %15, %21, %22 : vector<8x128xi1>, vector<8x128xf32>
    %24 = math.exp %23 : vector<8x128xf32>
    %cst_13 = arith.constant dense<0.000000e+00> : vector<8xf32>
    %25 = vector.multi_reduction <add>, %24, %cst_13 [1] : vector<8x128xf32> to vector<8xf32>
    %26 = vector.shape_cast %25 : vector<8xf32> to vector<8x1xf32>
    %27 = tpu.reciprocal %26 : vector<8x1xf32> -> vector<8x1xf32>
    %28 = vector.broadcast %27 : vector<8x1xf32> to vector<8x128xf32>
    %29 = arith.mulf %24, %28 : vector<8x128xf32>
    %c3_i32_14 = arith.constant 3 : i32
    %30 = vector.broadcast %c3_i32_14 : i32 to vector<8x128xi32>
    %31 = arith.cmpi eq, %13, %30 : vector<8x128xi32>
    %cst_15 = arith.constant 0.000000e+00 : f32
    %32 = vector.broadcast %cst_15 : f32 to vector<8x128xf32>
    %33 = arith.select %31, %12, %32 : vector<8x128xi1>, vector<8x128xf32>
    %34 = arith.addf %29, %33 : vector<8x128xf32>
    %c0_16 = arith.constant 0 : index
    %c0_17 = arith.constant 0 : index
    %35 = vector.load %arg5[%c0_16, %c0_17] : memref<8x128xf32, #tpu.memory_space<vmem>>, vector<8x128xf32>
    tpu.vector_store %arg5[%c0_16, %c0_17], %34 {strides = array<i32>} : memref<8x128xf32, #tpu.memory_space<vmem>>, vector<8x128xf32>,
    return
  }
  func.func @transform_0(%arg0: i32) -> (i32, i32) {
    %c0_i32 = arith.constant 0 : i32
    %c0_i32_0 = arith.constant 0 : i32
    return %arg0, %c0_i32 : i32, i32
  }
  func.func @transform_1(%arg0: i32) -> (i32, i32) {
    %c0_i32 = arith.constant 0 : i32
    %c0_i32_0 = arith.constant 0 : i32
    %c0_i32_1 = arith.constant 0 : i32
    return %c0_i32, %c0_i32_0 : i32, i32
  }
  func.func @transform_2(%arg0: i32) -> (i32, i32) {
    %c0_i32 = arith.constant 0 : i32
    %c0_i32_0 = arith.constant 0 : i32
    %c0_i32_1 = arith.constant 0 : i32
    return %c0_i32, %c0_i32_0 : i32, i32
  }
  func.func @transform_3(%arg0: i32) -> (i32, i32) {
    %c0_i32 = arith.constant 0 : i32
    %c0_i32_0 = arith.constant 0 : i32
    %c0_i32_1 = arith.constant 0 : i32
    return %c0_i32, %c0_i32_0 : i32, i32
  }
  func.func @transform_4(%arg0: i32) -> (i32, i32) {
    %c0_i32 = arith.constant 0 : i32
    %c0_i32_0 = arith.constant 0 : i32
    return %arg0, %c0_i32 : i32, i32
  }
}

</mosaic_0001>

<bundles_post_ra>
// kernel: tpu_custom_call.1
= control target key start
LH: loop header
LB: loop body
LE: loop exit
PB: predicated region body
PF: predicated region fallthrough
CT: control target
= control target key end

     0   :  { %9 = vsyncpa [#allocation3], 0  ;;  %s646_s0 = inlined_call_operand.hbm [shape: f32[8,128], index: 0, kind: input, shape index: {}]   ;;  %s647_s1 = inlined_call_operand.hbm [shape: f32[128,128], index: 1, kind: input, shape index: {}]   ;;  %s648_s2 = inlined_call_operand.hbm [shape: f32[128,128], index: 2, kind: input, shape index: {}]   ;;  %s649_s3 = inlined_call_operand.vmem [shape: f32[2,128], index: 3, kind: input, shape index: {}]   ;;  %s650_s4 = inlined_call_operand.hbm [shape: f32[8,128], index: 4, kind: output, shape index: {}]  }
   0x1   :  { %10 = vsyncpa [#allocation6], 0 }
   0x2   :  { %11 = vsyncpa [#allocation4], 0  ;;  %s536_s15 = smov [#allocation5]   ;;  %s442_s19 = scalar_lea.hbm %s647_s1, 2048 }
   0x3   :  { %s27_s16 = sshll.u32 %s536_s15, 4  ;;  %p443_p0 = scmp.ne.s32.totalorder %s647_s1, %s442_s19  ;;  %s28_s16 = int_to_ptr.vmem [resolvable:$true] %s27_s16 }
   0x4   :  { %p446_p1 = scmp.lt.u32.totalorder %s442_s19, %s647_s1 }
   0x6   :  { %p448_p2 = pnand %p446_p1, %p443_p0 }
   0x8   :  { %451 = shalt.err (!%p448_p2)
}
   0x9   :  { %s452_s24 = scalar_lea.vmem %s28_s16, 2048  ;;  %p457_p4 = scmp.lt.s32.totalorder %s28_s16, %s28_s16 }
   0xa   :  { %p453_p3 = scmp.ne.s32.totalorder %s28_s16, %s452_s24  ;;  %p458_p5 = scmp.lt.s32.totalorder %s452_s24, %s452_s24 }
   0xc   :  { %p459_p6 = por %p458_p5, %p457_p4 }
   0xe   :  { %p460_p7 = pnand %p459_p6, %p453_p3 }
  0x10   :  { %463 = shalt.err (!%p460_p7)
}
  0x11   :  { %s537_s25 = smov 128   ;;  %s538_s26 = smov 8  }
  0x12   :  { %33 = dma.hbm_to_vmem [thread:$0]  %s647_s1, 2048, %s28_s16, [#allocation6], %s537_s25, %s537_s25, %s538_s26  }
  0x13   :  { %s539_s29 = smov [#allocation2]   ;;  %s540_s5 = smov [#allocation7]  }
  0x14   :  { %s18_s30 = sshll.u32 %s539_s29, 4  ;;  %s39_s6 = sshll.u32 %s540_s5, 4  ;;  %s19_s30 = int_to_ptr.vmem [resolvable:$true] %s18_s30  ;;  %s40_s6 = int_to_ptr.vmem [resolvable:$true] %s39_s6 }
  0x15   :  { %s464_s9 = scalar_lea.hbm %s646_s0, 128 }
  0x16   :  { %p465_p8 = scmp.ne.s32.totalorder %s646_s0, %s464_s9  ;;  %p468_p9 = scmp.lt.u32.totalorder %s464_s9, %s646_s0 }
  0x18   :  { %p470_p10 = pnand %p468_p9, %p465_p8 }
  0x1a   :  { %473 = shalt.err (!%p470_p10)
}
  0x1b   :  { %s474_s1 = scalar_lea.vmem %s19_s30, 128  ;;  %p479_p12 = scmp.lt.s32.totalorder %s19_s30, %s19_s30 }
  0x1c   :  { %p475_p11 = scmp.ne.s32.totalorder %s19_s30, %s474_s1  ;;  %p480_p13 = scmp.lt.s32.totalorder %s474_s1, %s474_s1 }
  0x1e   :  { %p481_p0 = por %p480_p13, %p479_p12 }
  0x20   :  { %p482_p1 = pnand %p481_p0, %p475_p11 }
  0x22   :  { %485 = shalt.err (!%p482_p1)
}
  0x23   :  { %21 = dma.hbm_to_vmem [thread:$0]  %s646_s0, 128, %s19_s30, [#allocation3]  }
  0x24   :  { %s486_s18 = scalar_lea.hbm %s648_s2, 2048 }
  0x25   :  { %p487_p2 = scmp.ne.s32.totalorder %s648_s2, %s486_s18  ;;  %p490_p3 = scmp.lt.u32.totalorder %s486_s18, %s648_s2 }
  0x27   :  { %p492_p4 = pnand %p490_p3, %p487_p2 }
  0x29   :  { %495 = shalt.err (!%p492_p4)
}
  0x2a   :  { %s496_s23 = scalar_lea.vmem %s40_s6, 2048  ;;  %p501_p6 = scmp.lt.s32.totalorder %s40_s6, %s40_s6 }
  0x2b   :  { %p497_p5 = scmp.ne.s32.totalorder %s40_s6, %s496_s23  ;;  %p502_p7 = scmp.lt.s32.totalorder %s496_s23, %s496_s23 }
  0x2d   :  { %p503_p8 = por %p502_p7, %p501_p6 }
  0x2f   :  { %p504_p9 = pnand %p503_p8, %p497_p5 }
  0x31   :  { %507 = shalt.err (!%p504_p9)
}
  0x32   :  { %45 = dma.hbm_to_vmem [thread:$0]  %s648_s2, 2048, %s40_s6, [#allocation6], %s537_s25, %s537_s25, %s538_s26  }
  0x33   :  { %530 = dma.done.wait [#allocation3], 128  }
  0x34   :  { %531 = vsyncadd [#allocation3], 4294967168 }
  0x35   :  { %532 = dma.done.wait [#allocation6], 4096  }
  0x36   :  { %533 = vsyncadd [#allocation6], 4294963200  ;;  %v541_v0 = vmov 0.0|0.0   ;;  %vm542_vm0 = vmmov 0   ;;  %v543_v1 = vmov 0.0   ;;  %v58_v2 = vld [vmem:[#allocation5] sm:$0xff]  ;;  %v241_v56 = vlaneseq }
  0x37   :  { %381 = vmatprep.subr.bf16.mxu0 %v541_v0  ;;  %343 = vmatprep.mubr.msk.f32.mxu0 %vm542_vm0, %v543_v1  ;;  %v59_v3 = vld [vmem:[#allocation5 + $0x8] sm:$0xff]  ;;  %v60_v4 = vld [vmem:[#allocation5 + $0x10] sm:$0xff]  ;;  %v61_v6 = vld [vmem:[#allocation5 + $0x18] sm:$0xff]  ;;  %s544_s28 = smov [#allocation8]  }
  0x38   :  { %405 = vmatprep.subr.bf16.mxu1 %v541_v0  ;;  %378 = vmatprep.mubr.msk.f32.mxu1 %vm542_vm0, %v543_v1  ;;  %v382_v5 = vpack.c.bf16 %v59_v3, %v58_v2  ;;  %v385_v7 = vpack.c.bf16 %v61_v6, %v60_v4  ;;  %v62_v8 = vld [vmem:[#allocation5 + $0x20] sm:$0xff]  ;;  %v63_v9 = vld [vmem:[#allocation5 + $0x28] sm:$0xff]  ;;  %v152_v12 = vld [vmem:[#allocation7 + $0x10] sm:$0xff]  ;;  %v242_v57 = vand.u32 127, %v241_v56  ;;  %s265_s29 = sshll.u32 %s544_s28, 4  ;;  %s266_s29 = int_to_ptr.vmem [resolvable:$true] %s265_s29 }
  0x39   :  { %v150_v10 = vld [vmem:[#allocation7] sm:$0xff]  ;;  %v151_v11 = vld [vmem:[#allocation7 + $0x8] sm:$0xff]  ;;  %v153_v13 = vld [vmem:[#allocation7 + $0x18] sm:$0xff]  ;;  %v388_v14 = vpack.c.bf16 %v63_v9, %v62_v8  ;;  %p513_p11 = scmp.lt.s32.totalorder %s266_s29, %s266_s29 }
  0x3a   :  { %383 = vmatpush3.bf16.msra.mxu0 %v382_v5  ;;  %v406_v15 = vpack.c.bf16 %v151_v11, %v150_v10  ;;  %v64_v16 = vld [vmem:[#allocation5 + $0x30] sm:$0xff]  ;;  %v65_v17 = vld [vmem:[#allocation5 + $0x38] sm:$0xff]  ;;  %v409_v18 = vpack.c.bf16 %v153_v13, %v152_v12  ;;  %v154_v19 = vld [vmem:[#allocation7 + $0x20] sm:$0xff]  ;;  %vm243_vm1 = vcmp.lt.s32.totalorder %v242_v57, 3  ;;  %vm255_vm2 = vcmp.eq.s32.totalorder %v242_v57, 3 }
  0x3b   :  { %384 = vmatprep.subr.bf16.mxu0 %v541_v0  ;;  %v155_v20 = vld [vmem:[#allocation7 + $0x28] sm:$0xff]  ;;  %v391_v21 = vpack.c.bf16 %v65_v17, %v64_v16  ;;  %v66_v22 = vld [vmem:[#allocation5 + $0x40] sm:$0xff]  ;;  %v156_v25 = vld [vmem:[#allocation7 + $0x30] sm:$0xff] }
  0x3c   :  { %407 = vmatpush3.bf16.msra.mxu1 %v406_v15  ;;  %v67_v23 = vld [vmem:[#allocation5 + $0x48] sm:$0xff]  ;;  %v412_v24 = vpack.c.bf16 %v155_v20, %v154_v19  ;;  %v157_v26 = vld [vmem:[#allocation7 + $0x38] sm:$0xff]  ;;  %v68_v28 = vld [vmem:[#allocation5 + $0x50] sm:$0xff] }
  0x3d   :  { %408 = vmatprep.subr.bf16.mxu1 %v541_v0  ;;  %v394_v27 = vpack.c.bf16 %v67_v23, %v66_v22  ;;  %v69_v29 = vld [vmem:[#allocation5 + $0x58] sm:$0xff]  ;;  %v415_v30 = vpack.c.bf16 %v157_v26, %v156_v25  ;;  %v158_v31 = vld [vmem:[#allocation7 + $0x40] sm:$0xff]  ;;  %v159_v32 = vld [vmem:[#allocation7 + $0x48] sm:$0xff] }
  0x3e   :  { %386 = vmatpush3.bf16.msra.mxu0 %v385_v7  ;;  %v397_v33 = vpack.c.bf16 %v69_v29, %v68_v28  ;;  %v70_v34 = vld [vmem:[#allocation5 + $0x60] sm:$0xff]  ;;  %v71_v35 = vld [vmem:[#allocation5 + $0x68] sm:$0xff]  ;;  %v418_v36 = vpack.c.bf16 %v159_v32, %v158_v31  ;;  %v160_v37 = vld [vmem:[#allocation7 + $0x50] sm:$0xff] }
  0x3f   :  { %387 = vmatprep.subr.bf16.mxu0 %v541_v0  ;;  %v161_v38 = vld [vmem:[#allocation7 + $0x58] sm:$0xff]  ;;  %v400_v39 = vpack.c.bf16 %v71_v35, %v70_v34  ;;  %v72_v40 = vld [vmem:[#allocation5 + $0x70] sm:$0xff]  ;;  %v162_v43 = vld [vmem:[#allocation7 + $0x60] sm:$0xff] }
  0x40   :  { %410 = vmatpush3.bf16.msra.mxu1 %v409_v18  ;;  %v73_v41 = vld [vmem:[#allocation5 + $0x78] sm:$0xff]  ;;  %v421_v42 = vpack.c.bf16 %v161_v38, %v160_v37  ;;  %v163_v44 = vld [vmem:[#allocation7 + $0x68] sm:$0xff]  ;;  %v164_v48 = vld [vmem:[#allocation7 + $0x70] sm:$0xff] }
  0x41   :  { %411 = vmatprep.subr.bf16.mxu1 %v541_v0  ;;  %v403_v45 = vpack.c.bf16 %v73_v41, %v72_v40  ;;  %v424_v46 = vpack.c.bf16 %v163_v44, %v162_v43  ;;  %v57_v47 = vld [vmem:[#allocation2] sm:$0xff] }
  0x42   :  { %389 = vmatpush3.bf16.msra.mxu0 %v388_v14  ;;  %v165_v49 = vld [vmem:[#allocation7 + $0x78] sm:$0xff] }
  0x43   :  { %390 = vmatprep.subr.bf16.mxu0 %v541_v0  ;;  %v427_v50 = vpack.c.bf16 %v165_v49, %v164_v48  ;;  %v275_v51 = vld [vmem:[%s649_s3] ss:$0 sm:$0xff]  ;;  %v276_v58 = vld [vmem:[%s649_s3 + $0x1] ss:$0 sm:$0xff]  ;;  %s508_s3 = scalar_lea.vmem %s266_s29, 128 }
  0x44   :  { %413 = vmatpush3.bf16.msra.mxu1 %v412_v24  ;;  %p509_p10 = scmp.ne.s32.totalorder %s266_s29, %s508_s3  ;;  %p514_p12 = scmp.lt.s32.totalorder %s508_s3, %s508_s3 }
  0x45   :  { %414 = vmatprep.subr.bf16.mxu1 %v541_v0 }
  0x46   :  { %392 = vmatpush3.bf16.msra.mxu0 %v391_v21  ;;  %p515_p13 = por %p514_p12, %p513_p11 }
  0x47   :  { %393 = vmatprep.subr.bf16.mxu0 %v541_v0 }
  0x48   :  { %416 = vmatpush3.bf16.msra.mxu1 %v415_v30  ;;  %p516_p0 = pnand %p515_p13, %p509_p10 }
  0x49   :  { %417 = vmatprep.subr.bf16.mxu1 %v541_v0 }
  0x4a   :  { %395 = vmatpush3.bf16.msra.mxu0 %v394_v27 }
  0x4b   :  { %396 = vmatprep.subr.bf16.mxu0 %v541_v0 }
  0x4c   :  { %419 = vmatpush3.bf16.msra.mxu1 %v418_v36 }
  0x4d   :  { %420 = vmatprep.subr.bf16.mxu1 %v541_v0 }
  0x4e   :  { %398 = vmatpush3.bf16.msra.mxu0 %v397_v33 }
  0x4f   :  { %399 = vmatprep.subr.bf16.mxu0 %v541_v0 }
  0x50   :  { %422 = vmatpush3.bf16.msra.mxu1 %v421_v42 }
  0x51   :  { %423 = vmatprep.subr.bf16.mxu1 %v541_v0 }
  0x52   :  { %401 = vmatpush3.bf16.msra.mxu0 %v400_v39 }
  0x53   :  { %402 = vmatprep.subr.bf16.mxu0 %v541_v0 }
  0x54   :  { %425 = vmatpush3.bf16.msra.mxu1 %v424_v46 }
  0x55   :  { %426 = vmatprep.subr.bf16.mxu1 %v541_v0 }
  0x56   :  { %404 = vmatpush3.bf16.msra.mxu0 %v403_v45 }
  0x58   :  { %428 = vmatpush3.bf16.msra.mxu1 %v427_v50 }
  0x59   :  { %344 = vmatmul.mubr.f32.vlgmr.msra.gmra.mrb[0].mxu0 %v57_v47 }
 0x12c   :  { %v145_v52 = vpop.f32.mrb[0].mxu0 }
 0x12d   :  { %v146_v53 = vadd.f32 %v275_v51, %v145_v52  ;;  %v345_v54 = vpop.f32.mrb[1].mxu0 }
 0x12f   :  { %v149_v55 = vmax.f32 %v146_v53, 0.0 }
 0x131   :  { %379 = vmatmul.mubr.f32.vlgmr.msra.gmra.mrb[0].mxu1 %v149_v55 }
 0x204   :  { %v237_v59 = vpop.f32.mrb[0].mxu1 }
 0x205   :  { %v238_v60 = vadd.f32 %v276_v58, %v237_v59  ;;  %v380_v61 = vpop.f32.mrb[1].mxu1 }
 0x207   :  { %v244_v62 = vsel %vm243_vm1, %v238_v60, -inf  ;;  %v256_v7 = vsel %vm255_vm2, %v238_v60, 0.0 }
 0x208   :  { %245 = vmax.xlane.f32.xlu0 %v244_v62 }
 0x295   :  { %v246_v63 = vpop.xlane.xlu0 %245 }
 0x296   :  { %v247_v0 = vsub.f32 %v238_v60, %v246_v63 }
 0x298   :  { %v248_v1 = vsel %vm243_vm1, %v247_v0, -inf }
 0x299   :  { %v249_v2 = vmul.f32 1.442695, %v248_v1 }
 0x29b   :  { %438 = vpow2.f32 %v249_v2 }
 0x2a5   :  { %v439_v3 = vpop.eup %438 }
 0x2a6   :  { %251 = vadd.xlane.f32.xlu0 %v439_v3 }
 0x333   :  { %v252_v4 = vpop.xlane.xlu0 %251 }
 0x334   :  { %440 = vrcp.f32 %v252_v4 }
 0x33e   :  { %v441_v5 = vpop.eup %440 }
 0x33f   :  { %v254_v6 = vmul.f32 %v441_v5, %v439_v3 }
 0x341   :  { %v257_v8 = vadd.f32 %v256_v7, %v254_v6 }
 0x343   :  { %258 = vst [vmem:[#allocation8] sm:$0xff] %v257_v8 }
 0x344   :  { %519 = shalt.err (!%p516_p0)
}
 0x345   :  { %s520_s6 = scalar_lea.hbm %s650_s4, 128 }
 0x346   :  { %p521_p1 = scmp.ne.s32.totalorder %s650_s4, %s520_s6  ;;  %p524_p2 = scmp.lt.u32.totalorder %s520_s6, %s650_s4 }
 0x348   :  { %p526_p3 = pnand %p524_p2, %p521_p1 }
 0x34a   :  { %529 = shalt.err (!%p526_p3)
}
 0x34b   :  { %268 = dma.vmem_to_hbm [thread:$0]  %s266_s29, 128, %s650_s4, [#allocation4]  }
 0x34c   :  { %534 = dma.done.wait [#allocation4], 128  }
 0x34d   :  { %535 = vsyncadd [#allocation4], 4294967168 }
 0x34e   :  { %272 = vsyncpa [#allocation3], 1 }
 0x34f   :  { %273 = vsyncpa [#allocation6], 1 }
 0x350   :  { %274 = vsyncpa [#allocation4], 1 }

</bundles_post_ra>
